<compile_context>
chip_gen: v7x
topology: tpu7x:2x2x1
jax: 0.10.0
libtpu: 0.0.40
codegen_flags: <defaults>
</compile_context>

<pallas_src>
import functools

import jax
import jax.numpy as jnp
from jax.experimental import pallas as pl
from jax.experimental.pallas import tpu as pltpu


def _round_up(x, m):
    return ((x + m - 1) // m) * m


def _segment_mse_kernel(batch_ref, ew_ref, logits_ref, data_ref,
                        sums_ref, counts_ref, *, n_rows, tile_n, use_ew,
                        needs_mask):
    """One N-tile: per-block segment sums of ew*sum_d((x-y)^2) and counts."""
    t, d = logits_ref.shape
    b_pad = sums_ref.shape[0]

    diff = logits_ref[...].astype(jnp.float32) - data_ref[...].astype(jnp.float32)
    sq = diff * diff                                           # [T, D]
    if needs_mask:
        # Ragged last block: zero garbage rows so NaN/Inf cannot poison the
        # MXU dot (0 * NaN = NaN).  Static flag -> no cost on aligned N.
        i = pl.program_id(0)
        row = jax.lax.broadcasted_iota(jnp.int32, (t, d), 0) + i * tile_n
        sq = jnp.where(row < n_rows, sq, 0.0)

    # One-hot segment matrix, [B_pad, T]; padded batch ids are -1 -> all-zero
    # columns, so padded/garbage rows never contribute to sums or counts.
    seg = jax.lax.broadcasted_iota(jnp.int32, (b_pad, t), 0)
    onehot = (batch_ref[...] == seg).astype(jnp.float32)       # [B_pad, T]
    w_onehot = onehot * ew_ref[...] if use_ew else onehot      # row broadcast

    # MXU: segment-scatter + feature reduction in a single matmul.
    part = jnp.dot(w_onehot, sq, preferred_element_type=jnp.float32)  # [B_pad, D]
    sums_ref[...] = jnp.sum(part, axis=-1, keepdims=True)      # [B_pad, 1]
    counts_ref[...] = jnp.sum(onehot, axis=-1, keepdims=True)  # [B_pad, 1]


def interpolant_loss_forward(batch, logits, data, *, batch_size,
                             batch_weight=None, element_weight=None,
                             level=10000.0, loss_scale=1.0,
                             aggregation="mean", tile_n=None):
    """JAX/Pallas equivalent of InterpolantLossFunction(continuous=True).forward."""
    assert logits.ndim == 2 and data.shape == logits.shape
    n, d = logits.shape
    b_pad = _round_up(max(int(batch_size), 8), 8)
    use_ew = element_weight is not None
    # TODO(synk): for batch_size >> 128, tile the segment axis as a second
    # grid dimension instead of growing the [B_pad, T] one-hot.

    # ---- tile selection -----------------------------------------------------
    # Lane-dense side inputs require tile_n % 128 == 0 (or a single block).
    n8 = _round_up(n, 8)
    if tile_n is None:
        d_pad = _round_up(d, 128)
        tile_n = (2 << 20) // (4 * d_pad)                 # <=2 MiB VMEM / input block
        tile_n = min(tile_n, (4 << 20) // (4 * b_pad))    # keep one-hot <=4 MiB
        tile_n = min(tile_n, 8192)
        tile_n = max(tile_n, 128)
    if tile_n >= n8:
        tile_n = n8                                        # single (ragged) block
    else:
        tile_n = max(128, _round_up(int(tile_n), 128))
        if tile_n >= n8:
            tile_n = n8
    num_blocks = pl.cdiv(n, tile_n)
    n_pad = num_blocks * tile_n

    # Tiny side arrays: pad batch with -1 (never matches a segment) and the
    # element weights with 0; lane-dense (1, n_pad) layout.
    batch_row = jnp.pad(batch.astype(jnp.int32), (0, n_pad - n),
                        constant_values=-1).reshape(1, n_pad)
    if use_ew:
        ew_row = jnp.pad(element_weight.astype(jnp.float32),
                         (0, n_pad - n)).reshape(1, n_pad)
    else:
        ew_row = jnp.ones((1, n_pad), jnp.float32)         # DMA'd, not used

    kernel = functools.partial(
        _segment_mse_kernel, n_rows=n, tile_n=tile_n, use_ew=use_ew,
        needs_mask=(n % tile_n != 0))

    itemsize = jnp.dtype(logits.dtype).itemsize
    sums_out, counts_out = pl.pallas_call(
        kernel,
        out_shape=(jax.ShapeDtypeStruct((num_blocks * b_pad, 1), jnp.float32),
                   jax.ShapeDtypeStruct((num_blocks * b_pad, 1), jnp.float32)),
        grid=(num_blocks,),
        in_specs=[
            pl.BlockSpec((1, tile_n), lambda i: (0, i)),    # batch ids (lane-dense)
            pl.BlockSpec((1, tile_n), lambda i: (0, i)),    # element weights
            pl.BlockSpec((tile_n, d), lambda i: (i, 0)),    # logits
            pl.BlockSpec((tile_n, d), lambda i: (i, 0)),    # data
        ],
        out_specs=(pl.BlockSpec((b_pad, 1), lambda i: (i, 0)),
                   pl.BlockSpec((b_pad, 1), lambda i: (i, 0))),
        compiler_params=pltpu.CompilerParams(
            # Independent per-block outputs -> safe to shard across both
            # TensorCores on megacore chips (v7x).
            dimension_semantics=("parallel",),
            vmem_limit_bytes=32 * 1024 * 1024),
        cost_estimate=pl.CostEstimate(
            flops=int(n * (3 * d + 3 * b_pad)),
            transcendentals=0,
            bytes_accessed=int(2 * n * d * itemsize + 2 * n_pad * 4
                               + 2 * num_blocks * b_pad * 4)),
    )(batch_row, ew_row, logits, data)

    # ---- tiny finalize in plain JAX ------------------------------------------
    sums = jnp.sum(sums_out.reshape(num_blocks, b_pad)[:, :batch_size], axis=0)
    counts = jnp.sum(counts_out.reshape(num_blocks, b_pad)[:, :batch_size], axis=0)
    per_batch = jnp.where(counts > 0,
                          sums / (jnp.maximum(counts, 1.0) * float(d)), 0.0)
    if batch_weight is not None:
        per_batch = per_batch * batch_weight.astype(jnp.float32)
    if level is not None:
        per_batch = jnp.clip(per_batch, 0.0, float(level))
    if aggregation == "mean":
        loss = float(loss_scale) * jnp.mean(per_batch)
    else:
        loss = float(loss_scale) * jnp.sum(per_batch)
    # output = logits (identity) -> returned directly, never copied in-kernel.
    return loss, logits


def _reference_forward(batch, logits, data, batch_size, batch_weight,
                       element_weight, level, scale, aggregation="mean"):
    x = logits.astype(jnp.float32)
    y = data.astype(jnp.float32)
    per_elem = jnp.mean((x - y) ** 2, axis=-1)
    if element_weight is not None:
        per_elem = per_elem * element_weight.astype(jnp.float32)
    sums = jax.ops.segment_sum(per_elem, batch, num_segments=batch_size)
    counts = jax.ops.segment_sum(jnp.ones_like(per_elem), batch,
                                 num_segments=batch_size)
    per_batch = jnp.where(counts > 0, sums / jnp.maximum(counts, 1.0), 0.0)
    if batch_weight is not None:
        per_batch = per_batch * batch_weight.astype(jnp.float32)
    if level is not None:
        per_batch = jnp.clip(per_batch, 0.0, level)
    agg = jnp.mean if aggregation == "mean" else jnp.sum
    return scale * agg(per_batch)


if __name__ == "__main__":
    key = jax.random.PRNGKey(0)
    k1, k2, k3, k4, k5, k6, k7, k8 = jax.random.split(key, 8)

    # --- test 1: tiny single block, element + batch weights -------------------
    N, D, B = 16, 32, 2
    batch = jnp.repeat(jnp.arange(B, dtype=jnp.int32), N // B)
    logits = jax.random.normal(k1, (N, D), jnp.float32)
    data = jax.random.normal(k2, (N, D), jnp.float32)
    ew = jax.random.uniform(k3, (N,), jnp.float32) + 0.5
    bw = jax.random.uniform(k4, (B,), jnp.float32) + 0.5
    loss, out = interpolant_loss_forward(batch, logits, data, batch_size=B,
                                         batch_weight=bw, element_weight=ew,
                                         level=10000.0, loss_scale=1.0)
    jax.block_until_ready((loss, out))
    ref = _reference_forward(batch, logits, data, B, bw, ew, 10000.0, 1.0)
    assert jnp.allclose(loss, ref, rtol=1e-5, atol=1e-6), (loss, ref)
    assert out.shape == logits.shape and jnp.array_equal(out, logits)

    # --- test 2: multi-block grid with ragged last tile (300 rows, 128 tiles) --
    N2, D2, B2 = 300, 32, 3
    batch2 = jnp.concatenate([jnp.full((s,), i, jnp.int32)
                              for i, s in enumerate((100, 120, 80))])
    logits2 = jax.random.normal(k5, (N2, D2), jnp.float32)
    data2 = jax.random.normal(k6, (N2, D2), jnp.float32)
    loss2, _ = interpolant_loss_forward(batch2, logits2, data2, batch_size=B2,
                                        level=10000.0, loss_scale=2.0,
                                        tile_n=128)
    jax.block_until_ready(loss2)
    ref2 = _reference_forward(batch2, logits2, data2, B2, None, None,
                              10000.0, 2.0)
    assert jnp.allclose(loss2, ref2, rtol=1e-5, atol=1e-6), (loss2, ref2)

    # --- test 3: bf16 inputs, auto tile size, uneven segments -----------------
    N3, D3, B3 = 5000, 32, 6
    batch3 = jnp.minimum(jnp.arange(N3, dtype=jnp.int32) // 900, B3 - 1)
    logits3 = jax.random.normal(k7, (N3, D3), jnp.float32).astype(jnp.bfloat16)
    data3 = jax.random.normal(k8, (N3, D3), jnp.float32).astype(jnp.bfloat16)
    ew3 = jnp.linspace(0.5, 1.5, N3, dtype=jnp.float32)
    loss3, _ = interpolant_loss_forward(batch3, logits3, data3, batch_size=B3,
                                        element_weight=ew3, level=10000.0,
                                        loss_scale=0.5)
    jax.block_until_ready(loss3)
    ref3 = _reference_forward(batch3, logits3, data3, B3, None, ew3,
                              10000.0, 0.5)
    assert jnp.allclose(loss3, ref3, rtol=1e-4, atol=1e-5), (loss3, ref3)

    print("KERNEL_OK")
</pallas_src>

<mosaic_0001>
module attributes {stable_mosaic.version = 11 : i64} {
  func.func @_segment_mse_kernel(%arg0: i32, %arg1: memref<1x16xi32, #tpu.memory_space<vmem>>, %arg2: memref<1x16xf32, #tpu.memory_space<vmem>>, %arg3: memref<16x32xf32, #tpu.memory_space<vmem>>, %arg4: memref<16x32xf32, #tpu.memory_space<vmem>>, %arg5: memref<8x1xf32, #tpu.memory_space<vmem>>, %arg6: memref<8x1xf32, #tpu.memory_space<vmem>>) attributes {dimension_semantics = [#tpu.dimension_semantics<parallel>], iteration_bounds = array<i64: 1>, scalar_prefetch = 0 : i64, scratch_operands = 0 : i64, tpu.core_type = #tpu.core_type<tc>, window_params = [{transform_indices = @transform_0, window_bounds = array<i64: 1, 16>}, {transform_indices = @transform_1, window_bounds = array<i64: 1, 16>}, {transform_indices = @transform_2, window_bounds = array<i64: 16, 32>}, {transform_indices = @transform_3, window_bounds = array<i64: 16, 32>}, {transform_indices = @transform_4, window_bounds = array<i64: 8, 1>}, {transform_indices = @transform_5, window_bounds = array<i64: 8, 1>}]} {
    %c0 = arith.constant 0 : index
    %c0_0 = arith.constant 0 : index
    %0 = vector.load %arg3[%c0, %c0_0] : memref<16x32xf32, #tpu.memory_space<vmem>>, vector<16x32xf32>
    %c0_1 = arith.constant 0 : index
    %c0_2 = arith.constant 0 : index
    %1 = vector.load %arg4[%c0_1, %c0_2] : memref<16x32xf32, #tpu.memory_space<vmem>>, vector<16x32xf32>
    %2 = arith.subf %0, %1 : vector<16x32xf32>
    %3 = arith.mulf %2, %2 : vector<16x32xf32>
    %4 = tpu.iota {dimensions = array<i32: 0>} : vector<8x16xi32>
    %c0_3 = arith.constant 0 : index
    %c0_4 = arith.constant 0 : index
    %5 = vector.load %arg1[%c0_3, %c0_4] : memref<1x16xi32, #tpu.memory_space<vmem>>, vector<1x16xi32>
    %6 = vector.broadcast %5 : vector<1x16xi32> to vector<8x16xi32>
    %7 = arith.cmpi eq, %6, %4 : vector<8x16xi32>
    %8 = arith.extui %7 : vector<8x16xi1> to vector<8x16xi32>
    %9 = arith.sitofp %8 : vector<8x16xi32> to vector<8x16xf32>
    %c0_5 = arith.constant 0 : index
    %c0_6 = arith.constant 0 : index
    %10 = vector.load %arg2[%c0_5, %c0_6] : memref<1x16xf32, #tpu.memory_space<vmem>>, vector<1x16xf32>
    %11 = vector.broadcast %10 : vector<1x16xf32> to vector<8x16xf32>
    %12 = arith.mulf %9, %11 : vector<8x16xf32>
    %cst = arith.constant dense<0.000000e+00> : vector<8x32xf32>
    %13 = tpu.matmul %12, %3, %cst {dimension_numbers = #tpu.dot_dimension_numbers<[1], [0], [0], [1], [0, 0, 1, 1], [], []>} : vector<8x16xf32>, vector<16x32xf32>, vector<8x32xf32> -> vector<8x32xf32>
    %cst_7 = arith.constant dense<0.000000e+00> : vector<8xf32>
    %14 = vector.multi_reduction <add>, %13, %cst_7 [1] : vector<8x32xf32> to vector<8xf32>
    %15 = vector.shape_cast %14 : vector<8xf32> to vector<8x1xf32>
    %c0_8 = arith.constant 0 : index
    %c0_9 = arith.constant 0 : index
    %16 = vector.load %arg5[%c0_8, %c0_9] : memref<8x1xf32, #tpu.memory_space<vmem>>, vector<8x1xf32>
    tpu.vector_store %arg5[%c0_8, %c0_9], %15 {strides = array<i32>} : memref<8x1xf32, #tpu.memory_space<vmem>>, vector<8x1xf32>,
    %cst_10 = arith.constant dense<0.000000e+00> : vector<8xf32>
    %17 = vector.multi_reduction <add>, %9, %cst_10 [1] : vector<8x16xf32> to vector<8xf32>
    %18 = vector.shape_cast %17 : vector<8xf32> to vector<8x1xf32>
    %c0_11 = arith.constant 0 : index
    %c0_12 = arith.constant 0 : index
    %19 = vector.load %arg6[%c0_11, %c0_12] : memref<8x1xf32, #tpu.memory_space<vmem>>, vector<8x1xf32>
    tpu.vector_store %arg6[%c0_11, %c0_12], %18 {strides = array<i32>} : memref<8x1xf32, #tpu.memory_space<vmem>>, vector<8x1xf32>,
    return
  }
  func.func @transform_0(%arg0: i32) -> (i32, i32) {
    %c0_i32 = arith.constant 0 : i32
    %c0_i32_0 = arith.constant 0 : i32
    return %c0_i32, %arg0 : i32, i32
  }
  func.func @transform_1(%arg0: i32) -> (i32, i32) {
    %c0_i32 = arith.constant 0 : i32
    %c0_i32_0 = arith.constant 0 : i32
    return %c0_i32, %arg0 : i32, i32
  }
  func.func @transform_2(%arg0: i32) -> (i32, i32) {
    %c0_i32 = arith.constant 0 : i32
    %c0_i32_0 = arith.constant 0 : i32
    return %arg0, %c0_i32 : i32, i32
  }
  func.func @transform_3(%arg0: i32) -> (i32, i32) {
    %c0_i32 = arith.constant 0 : i32
    %c0_i32_0 = arith.constant 0 : i32
    return %arg0, %c0_i32 : i32, i32
  }
  func.func @transform_4(%arg0: i32) -> (i32, i32) {
    %c0_i32 = arith.constant 0 : i32
    %c0_i32_0 = arith.constant 0 : i32
    return %arg0, %c0_i32 : i32, i32
  }
  func.func @transform_5(%arg0: i32) -> (i32, i32) {
    %c0_i32 = arith.constant 0 : i32
    %c0_i32_0 = arith.constant 0 : i32
    return %arg0, %c0_i32 : i32, i32
  }
}

</mosaic_0001>

<bundles_post_ra>
// kernel: tpu_custom_call.1
= control target key start
LH: loop header
LB: loop body
LE: loop exit
PB: predicated region body
PF: predicated region fallthrough
CT: control target
= control target key end

     0   :  { %11 = vsyncpa [#allocation3], 0  ;;  %s362_s0 = inlined_call_operand.hbm [shape: s32[1,16], index: 0, kind: input, shape index: {}]   ;;  %s363_s1 = inlined_call_operand.vmem [shape: f32[1,16], index: 1, kind: input, shape index: {}]   ;;  %s364_s2 = inlined_call_operand.hbm [shape: f32[16,32], index: 2, kind: input, shape index: {}]   ;;  %s365_s3 = inlined_call_operand.hbm [shape: f32[16,32], index: 3, kind: input, shape index: {}]   ;;  %s366_s4 = inlined_call_operand.vmem [shape: f32[8,1], index: 4, kind: output, shape index: {0}]   ;;  %s367_s5 = inlined_call_operand.vmem [shape: f32[8,1], index: 5, kind: output, shape index: {1}]  }
   0x1   :  { %12 = vsyncpa [#allocation5], 0  ;;  %s273_s18 = smov [#allocation4]   ;;  %s203_s22 = scalar_lea.hbm %s364_s2, 256 }
   0x2   :  { %s30_s19 = sshll.u32 %s273_s18, 4  ;;  %p204_p0 = scmp.ne.s32.totalorder %s364_s2, %s203_s22  ;;  %s31_s19 = int_to_ptr.vmem [resolvable:$true] %s30_s19 }
   0x3   :  { %p207_p1 = scmp.lt.u32.totalorder %s203_s22, %s364_s2 }
   0x5   :  { %p209_p2 = pnand %p207_p1, %p204_p0 }
   0x7   :  { %212 = shalt.err (!%p209_p2)
}
   0x8   :  { %s213_s27 = scalar_lea.vmem %s31_s19, 256  ;;  %p218_p4 = scmp.lt.s32.totalorder %s31_s19, %s31_s19 }
   0x9   :  { %p214_p3 = scmp.ne.s32.totalorder %s31_s19, %s213_s27  ;;  %p219_p5 = scmp.lt.s32.totalorder %s213_s27, %s213_s27 }
   0xb   :  { %p220_p6 = por %p219_p5, %p218_p4 }
   0xd   :  { %p221_p7 = pnand %p220_p6, %p214_p3 }
   0xf   :  { %224 = shalt.err (!%p221_p7)
}
  0x10   :  { %s274_s28 = smov 128   ;;  %s275_s29 = smov 8  }
  0x11   :  { %36 = dma.hbm_to_vmem [thread:$0]  %s364_s2, 256, %s31_s19, [#allocation5], %s274_s28, %s274_s28, %s275_s29  }
  0x12   :  { %s276_s7 = smov [#allocation2]   ;;  %s277_s9 = smov [#allocation6]  }
  0x13   :  { %s19_s8 = sshll.u32 %s276_s7, 4  ;;  %s42_s10 = sshll.u32 %s277_s9, 4  ;;  %s20_s8 = int_to_ptr.vmem [resolvable:$true] %s19_s8  ;;  %s43_s10 = int_to_ptr.vmem [resolvable:$true] %s42_s10 }
  0x14   :  { %s225_s13 = scalar_lea.hbm %s362_s0, 16 }
  0x15   :  { %p226_p8 = scmp.ne.s32.totalorder %s362_s0, %s225_s13  ;;  %p229_p9 = scmp.lt.u32.totalorder %s225_s13, %s362_s0 }
  0x17   :  { %p231_p10 = pnand %p229_p9, %p226_p8 }
  0x19   :  { %234 = shalt.err (!%p231_p10)
}
  0x1a   :  { %s235_s2 = scalar_lea.vmem %s20_s8, 16  ;;  %s239_s18 = scalar_lea.vmem %s20_s8, 32 }
  0x1b   :  { %p236_p11 = scmp.ne.s32.totalorder %s20_s8, %s235_s2  ;;  %p240_p12 = scmp.lt.s32.totalorder %s20_s8, %s20_s8 }
  0x1c   :  { %p241_p13 = scmp.lt.s32.totalorder %s239_s18, %s235_s2 }
  0x1e   :  { %p242_p0 = por %p241_p13, %p240_p12 }
  0x20   :  { %p243_p1 = pnand %p242_p0, %p236_p11 }
  0x22   :  { %246 = shalt.err (!%p243_p1)
}
  0x23   :  { %22 = dma.hbm_to_vmem [thread:$0]  %s362_s0, 16, %s20_s8, [#allocation3]  }
  0x24   :  { %s247_s23 = scalar_lea.hbm %s365_s3, 256 }
  0x25   :  { %p248_p2 = scmp.ne.s32.totalorder %s365_s3, %s247_s23  ;;  %p251_p3 = scmp.lt.u32.totalorder %s247_s23, %s365_s3 }
  0x27   :  { %p253_p4 = pnand %p251_p3, %p248_p2 }
  0x29   :  { %256 = shalt.err (!%p253_p4)
}
  0x2a   :  { %s257_s30 = scalar_lea.vmem %s43_s10, 256  ;;  %p262_p6 = scmp.lt.s32.totalorder %s43_s10, %s43_s10 }
  0x2b   :  { %p258_p5 = scmp.ne.s32.totalorder %s43_s10, %s257_s30  ;;  %p263_p7 = scmp.lt.s32.totalorder %s257_s30, %s257_s30 }
  0x2d   :  { %p264_p8 = por %p263_p7, %p262_p6 }
  0x2f   :  { %p265_p9 = pnand %p264_p8, %p258_p5 }
  0x31   :  { %268 = shalt.err (!%p265_p9)
}
  0x32   :  { %48 = dma.hbm_to_vmem [thread:$0]  %s365_s3, 256, %s43_s10, [#allocation5], %s274_s28, %s274_s28, %s275_s29  }
  0x33   :  { %269 = dma.done.wait [#allocation3], 16  }
  0x34   :  { %270 = vsyncadd [#allocation3], 4294967280 }
  0x35   :  { %271 = dma.done.wait [#allocation5], 512  }
  0x36   :  { %272 = vsyncadd [#allocation5], 4294966784  ;;  %v278_v0 = vmov 0.0|0.0   ;;  %v66_v1 = vlaneseq  ;;  %vm279_vm0 = vmmov 0   ;;  %v280_v2 = vmov 0.0   ;;  %v58_v4 = vld [vmem:[#allocation4] sm:$0xff] }
  0x37   :  { %192 = vmatprep.subr.bf16.mxu0 %v278_v0  ;;  %189 = vmatprep.mubr.msk.f32.mxu0 %vm279_vm0, %v280_v2  ;;  %v59_v5 = vld [vmem:[#allocation4 + $0x8] sm:$0xff]  ;;  %v60_v6 = vld [vmem:[#allocation6] sm:$0xff]  ;;  %v61_v7 = vld [vmem:[#allocation6 + $0x8] sm:$0xff]  ;;  %vm84_vm2 = vcmask 130048   ;;  %vm158_vm3 = vcmask 261120   ;;  %vm162_vm4 = vcmask 7168  }
  0x38   :  { %v67_v3 = vshrl.u32 %v66_v1, 7  ;;  %v62_v8 = vsub.f32 %v58_v4, %v60_v6  ;;  %v178_v9 = vld [vmem:[#allocation2] ss:$0 sm:$0xff]  ;;  %v63_v10 = vsub.f32 %v59_v5, %v61_v7  ;;  %v180_v14 = vld [vmem:[%s363_s1] ss:$0 sm:$0xff] }
  0x3a   :  { %vm73_vm1 = vcmp.eq.s32.totalorder %v178_v9, %v67_v3  ;;  %v64_v11 = vmul.f32 %v62_v8, %v62_v8  ;;  %v65_v12 = vmul.f32 %v63_v10, %v63_v10 }
  0x3b   :  { %v179_v13 = vsel %vm73_vm1, 1.0, %v280_v2 }
  0x3c   :  { %v193_v15 = vpack.c.bf16 %v65_v12, %v64_v11  ;;  %v83_v16 = vmul.f32 %v180_v14, %v179_v13  ;;  %v164_v20 = vsel %vm84_vm2, %v179_v13, 0.0 }
  0x3e   :  { %194 = vmatpush3.bf16.msra.mxu0 %v193_v15 }
  0x41   :  { %190 = vmatmul.mubr.msk.f32.vlgmr.msra.gmra.mrb[0].mxu0 %vm84_vm2, %v83_v16 }
 0x114   :  { %v154_v17 = vpop.f32.mrb[0].mxu0 }
 0x115   :  { %v191_v18 = vpop.f32.mrb[1].mxu0  ;;  %v159_v19 = vsel %vm158_vm3, %v154_v17, 0.0 }
 0x116   :  { %160 = vadd.xlane.f32.xlu0 %v159_v19 }
 0x11a   :  { %165 = vadd.xlane.f32.xlu0 %v164_v20 }
 0x1a3   :  { %v161_v21 = vpop.xlane.xlu0 %160 }
 0x1a4   :  { %163 = vst.msk [vmem:[%s366_s4] sm:$0xff] %vm162_vm4, %v161_v21 }
 0x1a7   :  { %v166_v22 = vpop.xlane.xlu0 %165 }
 0x1a8   :  { %167 = vst.msk [vmem:[%s367_s5] sm:$0xff] %vm162_vm4, %v166_v22 }
 0x1a9   :  { %176 = vsyncpa [#allocation3], 1 }
 0x1aa   :  { %177 = vsyncpa [#allocation5], 1 }

</bundles_post_ra>
